<compile_context>
chip_gen: v7x
topology: tpu7x:2x2x1
jax: 0.10.0
libtpu: 0.0.40
codegen_flags: <defaults>
</compile_context>

<pallas_src>
import jax
import jax.numpy as jnp
from jax.experimental import pallas as pl

LANE = 128  # TPU lane width


def dqn_kernel(x_ref, w1_ref, gb_ref, w2b_ref, o_ref):
    hid = w1_ref.shape[1]  # 32

    # --- Linear 1: (B, n_obs) @ (n_obs, 32) ---  (bias cancels under batch-stat BN)
    h = jnp.dot(x_ref[...], w1_ref[...], preferred_element_type=jnp.float32)

    # --- BatchNorm1d (training mode: biased batch stats, eps=1e-5), folded affine ---
    mean = jnp.mean(h, axis=0, keepdims=True)                       # (1, 32)
    ex2 = jnp.mean(h * h, axis=0, keepdims=True)                    # (1, 32)
    var = jnp.maximum(ex2 - mean * mean, 0.0)                       # biased variance
    gb = gb_ref[...]                                                # (2, 32): [gamma; beta]
    scale = gb[0:1, :] * jax.lax.rsqrt(var + 1e-5)                  # (1, 32) prework (EUP)
    shift = gb[1:2, :] - mean * scale                               # (1, 32) prework
    hn = h * scale + shift                                          # 2 full-tile VALU ops

    # --- LeakyReLU (negative_slope = 0.01): mul + max ---
    a = jnp.maximum(hn, 0.01 * hn)

    # --- Linear 2: rows [0:32] of w2b are W2, row [32] is b2 (8-aligned sublane slice) ---
    w2 = w2b_ref[0:hid, :]                                          # (32, n_pad)
    b2 = w2b_ref[hid:hid + 1, :]                                    # (1,  n_pad)
    o_ref[...] = jnp.dot(a, w2, preferred_element_type=jnp.float32) + b2


@jax.jit
def dqn_forward(x, w1, b1, gamma, beta, w2, b2):
    """Fused DQN forward.  `b1` is accepted for PyTorch parameter parity but is a
    mathematical no-op under training-mode BatchNorm, so it is not sent to the kernel."""
    del b1
    B = x.shape[0]
    hidden = w1.shape[1]
    n_actions = w2.shape[1]

    # Lane-dense output: pad the action dim to a multiple of 128 so output stores are
    # unmasked; zero-padded columns produce zeros and are sliced off below.
    n_pad = ((n_actions + LANE - 1) // LANE) * LANE

    # Pack small params to minimize pallas_call operands (and hence input DMAs).
    gb = jnp.concatenate(
        [gamma.reshape(1, hidden), beta.reshape(1, hidden)], axis=0)          # (2, 32)
    w2b = jnp.concatenate([w2, b2.reshape(1, n_actions)], axis=0)             # (33, n_act)
    w2b = jnp.pad(w2b, ((0, 0), (0, n_pad - n_actions)))                      # (33, n_pad)

    full = lambda shape: pl.BlockSpec(shape, lambda: (0,) * len(shape))

    out = pl.pallas_call(
        dqn_kernel,
        out_shape=jax.ShapeDtypeStruct((B, n_pad), jnp.float32),
        grid=(),
        in_specs=[
            full(x.shape),
            full(w1.shape),
            full(gb.shape),
            full(w2b.shape),
        ],
        out_specs=full((B, n_pad)),
    )(x, w1, gb, w2b)

    return out[:, :n_actions]


def init_params(key, n_observations, n_actions, hidden=32):
    """Deterministic init mimicking PyTorch nn.Linear default (uniform(+-1/sqrt(fan_in)))
    and nn.BatchNorm1d default (gamma=1, beta=0)."""
    k1, k2, k3, k4 = jax.random.split(key, 4)
    bound1 = 1.0 / jnp.sqrt(n_observations)
    bound2 = 1.0 / jnp.sqrt(hidden)
    w1 = jax.random.uniform(k1, (n_observations, hidden), jnp.float32, -bound1, bound1)
    b1 = jax.random.uniform(k2, (1, hidden), jnp.float32, -bound1, bound1)
    w2 = jax.random.uniform(k3, (hidden, n_actions), jnp.float32, -bound2, bound2)
    b2 = jax.random.uniform(k4, (1, n_actions), jnp.float32, -bound2, bound2)
    gamma = jnp.ones((1, hidden), jnp.float32)
    beta = jnp.zeros((1, hidden), jnp.float32)
    return w1, b1, gamma, beta, w2, b2


def dqn_ref(x, w1, b1, gamma, beta, w2, b2):
    """Pure-JAX reference matching the PyTorch training-mode forward exactly (incl. b1)."""
    h = x @ w1 + b1
    mean = jnp.mean(h, axis=0, keepdims=True)
    var = jnp.mean((h - mean) ** 2, axis=0, keepdims=True)
    hn = (h - mean) / jnp.sqrt(var + 1e-5) * gamma + beta
    a = jnp.where(hn >= 0, hn, 0.01 * hn)
    return a @ w2 + b2


if __name__ == "__main__":
    key = jax.random.PRNGKey(0)
    k_params, k_x = jax.random.split(key)

    B = 8              # batch size (>1 required for training-mode BatchNorm1d)
    n_observations = 16
    n_actions = 4

    params = init_params(k_params, n_observations, n_actions)
    x = jax.random.normal(k_x, (B, n_observations), jnp.float32)

    out = dqn_forward(x, *params)
    out = jax.block_until_ready(out)

    ref = dqn_ref(x, *params)
    assert out.shape == (B, n_actions), out.shape
    assert jnp.allclose(out, ref, atol=1e-4, rtol=1e-4), (
        "mismatch vs reference", float(jnp.max(jnp.abs(out - ref)))
    )

    print("KERNEL_OK")
</pallas_src>

<mosaic_0001>
module attributes {stable_mosaic.version = 11 : i64} {
  func.func @dqn_kernel(%arg0: memref<8x16xf32, #tpu.memory_space<vmem>>, %arg1: memref<16x32xf32, #tpu.memory_space<vmem>>, %arg2: memref<2x32xf32, #tpu.memory_space<vmem>>, %arg3: memref<33x128xf32, #tpu.memory_space<vmem>>, %arg4: memref<8x128xf32, #tpu.memory_space<vmem>>) attributes {dimension_semantics = [], scalar_prefetch = 0 : i64, scratch_operands = 0 : i64, tpu.core_type = #tpu.core_type<tc>} {
    %c0 = arith.constant 0 : index
    %c0_0 = arith.constant 0 : index
    %0 = vector.load %arg0[%c0, %c0_0] : memref<8x16xf32, #tpu.memory_space<vmem>>, vector<8x16xf32>
    %c0_1 = arith.constant 0 : index
    %c0_2 = arith.constant 0 : index
    %1 = vector.load %arg1[%c0_1, %c0_2] : memref<16x32xf32, #tpu.memory_space<vmem>>, vector<16x32xf32>
    %cst = arith.constant dense<0.000000e+00> : vector<8x32xf32>
    %2 = tpu.matmul %0, %1, %cst {dimension_numbers = #tpu.dot_dimension_numbers<[1], [0], [0], [1], [0, 0, 1, 1], [], []>} : vector<8x16xf32>, vector<16x32xf32>, vector<8x32xf32> -> vector<8x32xf32>
    %cst_3 = arith.constant dense<0.000000e+00> : vector<32xf32>
    %3 = vector.multi_reduction <add>, %2, %cst_3 [0] : vector<8x32xf32> to vector<32xf32>
    %4 = vector.shape_cast %3 : vector<32xf32> to vector<1x32xf32>
    %cst_4 = arith.constant 8.000000e+00 : f32
    %5 = vector.broadcast %cst_4 : f32 to vector<1x32xf32>
    %6 = arith.divf %4, %5 : vector<1x32xf32>
    %7 = arith.mulf %2, %2 : vector<8x32xf32>
    %cst_5 = arith.constant dense<0.000000e+00> : vector<32xf32>
    %8 = vector.multi_reduction <add>, %7, %cst_5 [0] : vector<8x32xf32> to vector<32xf32>
    %9 = vector.shape_cast %8 : vector<32xf32> to vector<1x32xf32>
    %cst_6 = arith.constant 8.000000e+00 : f32
    %10 = vector.broadcast %cst_6 : f32 to vector<1x32xf32>
    %11 = arith.divf %9, %10 : vector<1x32xf32>
    %12 = arith.mulf %6, %6 : vector<1x32xf32>
    %13 = arith.subf %11, %12 : vector<1x32xf32>
    %cst_7 = arith.constant 0.000000e+00 : f32
    %14 = vector.broadcast %cst_7 : f32 to vector<1x32xf32>
    %15 = arith.maximumf %13, %14 : vector<1x32xf32>
    %c0_8 = arith.constant 0 : index
    %c0_9 = arith.constant 0 : index
    %16 = vector.load %arg2[%c0_8, %c0_9] : memref<2x32xf32, #tpu.memory_space<vmem>>, vector<2x32xf32>
    %17 = vector.extract_strided_slice %16 {offsets = [0, 0], sizes = [1, 32], strides = [1, 1]} : vector<2x32xf32> to vector<1x32xf32>
    %cst_10 = arith.constant 9.99999974E-6 : f32
    %18 = vector.broadcast %cst_10 : f32 to vector<1x32xf32>
    %19 = arith.addf %15, %18 : vector<1x32xf32>
    %20 = math.rsqrt %19 : vector<1x32xf32>
    %21 = arith.mulf %17, %20 : vector<1x32xf32>
    %22 = vector.extract_strided_slice %16 {offsets = [1, 0], sizes = [1, 32], strides = [1, 1]} : vector<2x32xf32> to vector<1x32xf32>
    %23 = arith.mulf %6, %21 : vector<1x32xf32>
    %24 = arith.subf %22, %23 : vector<1x32xf32>
    %25 = vector.broadcast %21 : vector<1x32xf32> to vector<8x32xf32>
    %26 = arith.mulf %2, %25 : vector<8x32xf32>
    %27 = vector.broadcast %24 : vector<1x32xf32> to vector<8x32xf32>
    %28 = arith.addf %26, %27 : vector<8x32xf32>
    %cst_11 = arith.constant 0.00999999977 : f32
    %29 = vector.broadcast %cst_11 : f32 to vector<8x32xf32>
    %30 = arith.mulf %29, %28 : vector<8x32xf32>
    %31 = arith.maximumf %28, %30 : vector<8x32xf32>
    %c0_12 = arith.constant 0 : index
    %c0_13 = arith.constant 0 : index
    %32 = vector.load %arg3[%c0_12, %c0_13] : memref<33x128xf32, #tpu.memory_space<vmem>>, vector<32x128xf32>
    %c32 = arith.constant 32 : index
    %c0_14 = arith.constant 0 : index
    %33 = vector.load %arg3[%c32, %c0_14] : memref<33x128xf32, #tpu.memory_space<vmem>>, vector<1x128xf32>
    %cst_15 = arith.constant dense<0.000000e+00> : vector<8x128xf32>
    %34 = tpu.matmul %31, %32, %cst_15 {dimension_numbers = #tpu.dot_dimension_numbers<[1], [0], [0], [1], [0, 0, 1, 1], [], []>} : vector<8x32xf32>, vector<32x128xf32>, vector<8x128xf32> -> vector<8x128xf32>
    %35 = vector.broadcast %33 : vector<1x128xf32> to vector<8x128xf32>
    %36 = arith.addf %34, %35 : vector<8x128xf32>
    %c0_16 = arith.constant 0 : index
    %c0_17 = arith.constant 0 : index
    %37 = vector.load %arg4[%c0_16, %c0_17] : memref<8x128xf32, #tpu.memory_space<vmem>>, vector<8x128xf32>
    tpu.vector_store %arg4[%c0_16, %c0_17], %36 {strides = array<i32>} : memref<8x128xf32, #tpu.memory_space<vmem>>, vector<8x128xf32>,
    return
  }
}

</mosaic_0001>

<bundles_post_ra>
// kernel: dqn_forward.1
= control target key start
LH: loop header
LB: loop body
LE: loop exit
PB: predicated region body
PF: predicated region fallthrough
CT: control target
= control target key end

     0   :  { %v267_v0 = vmov 0.0|0.0   ;;  %vm268_vm0 = vmmov 0   ;;  %v269_v3 = vmov 0.0   ;;  %vm20_vm1 = vcmask 130048   ;;  %s328_s1 = inlined_call_operand.vmem [shape: f32[16,32], index: 1, kind: input, shape index: {}]   ;;  %s329_s0 = inlined_call_operand.vmem [shape: f32[8,16], index: 0, kind: input, shape index: {}]   ;;  %s330_s3 = inlined_call_operand.vmem [shape: f32[33,128], index: 3, kind: input, shape index: {}]   ;;  %s331_s2 = inlined_call_operand.vmem [shape: f32[2,32], index: 2, kind: input, shape index: {}]   ;;  %s332_s4 = inlined_call_operand.vmem [shape: f32[8,128], index: 4, kind: output, shape index: {}]  }
   0x1   :  { %253 = vmatprep.subr.bf16.mxu0 %v267_v0  ;;  %v18_v1 = vld [vmem:[%s328_s1] sm:$0xff]  ;;  %v19_v2 = vld [vmem:[%s328_s1 + $0x8] sm:$0xff]  ;;  %239 = vmatprep.mubr.msk.f32.mxu0 %vm268_vm0, %v269_v3  ;;  %v139_v9 = vld [vmem:[%s330_s3 + $0x10] sm:$0xff]  ;;  %vm94_vm2 = vcmask 261120   ;;  %v125_v35 = vlaneseq }
   0x2   :  { %v254_v4 = vpack.c.bf16 %v19_v2, %v18_v1  ;;  %256 = vmatprep.subr.bf16.mxu1 %v267_v0  ;;  %250 = vmatprep.mubr.msk.f32.mxu1 %vm268_vm0, %v269_v3  ;;  %v17_v5 = vld [vmem:[%s329_s0] sm:$0xff]  ;;  %v138_v7 = vld [vmem:[%s330_s3 + $0x8] sm:$0xff]  ;;  %v140_v10 = vld [vmem:[%s330_s3 + $0x18] sm:$0xff] }
   0x3   :  { %v137_v6 = vld [vmem:[%s330_s3] sm:$0xff]  ;;  %v260_v11 = vpack.c.bf16 %v140_v10, %v139_v9  ;;  %v126_v36 = vshrl.u32 %v125_v35, 7 }
   0x4   :  { %255 = vmatpush3.bf16.msra.mxu0 %v254_v4  ;;  %v257_v8 = vpack.c.bf16 %v138_v7, %v137_v6  ;;  %v116_v37 = vld [vmem:[%s331_s2] sm:$0x3] }
   0x5   :  { %v127_v40 = vsub.s32 0, %v126_v36  ;;  %v132_v44 = vsub.s32 1, %v126_v36  ;;  %v225_v51 = vld [vmem:[%s330_s3 + $0x20] ss:$0 sm:$0xff] }
   0x6   :  { %258 = vmatpush3.bf16.msra.mxu1 %v257_v8 }
   0x7   :  { %240 = vmatmul.mubr.msk.f32.vlgmr.msra.gmra.mrb[0].mxu0 %vm20_vm1, %v17_v5  ;;  %259 = vmatprep.subr.bf16.mxu1 %v267_v0 }
   0xa   :  { %261 = vmatpush3.bf16.msra.mxu1 %v260_v11 }
  0xda   :  { %v90_v12 = vpop.f32.mrb[0].mxu0 }
  0xdb   :  { %v95_v13 = vsel %vm94_vm2, %v90_v12, 0.0  ;;  %v104_v14 = vmul.f32 %v90_v12, %v90_v12  ;;  %v241_v15 = vpop.f32.mrb[1].mxu0 }
  0xdc   :  { %v96_v16 = vrot.slane %v95_v13, 4 }
  0xdd   :  { %v105_v17 = vsel %vm94_vm2, %v104_v14, 0.0 }
  0xde   :  { %v97_v18 = vadd.f32 %v96_v16, %v95_v13  ;;  %v106_v19 = vrot.slane %v105_v17, 4 }
  0xe0   :  { %v98_v20 = vrot.slane %v97_v18, 2  ;;  %v107_v21 = vadd.f32 %v106_v19, %v105_v17 }
  0xe2   :  { %v99_v22 = vadd.f32 %v98_v20, %v97_v18  ;;  %v108_v23 = vrot.slane %v107_v21, 2 }
  0xe4   :  { %v100_v24 = vrot.slane %v99_v22, 1  ;;  %v109_v25 = vadd.f32 %v108_v23, %v107_v21 }
  0xe6   :  { %v101_v26 = vadd.f32 %v100_v24, %v99_v22  ;;  %v110_v27 = vrot.slane %v109_v25, 1 }
  0xe8   :  { %v103_v28 = vmul.f32 0.125, %v101_v26  ;;  %v111_v29 = vadd.f32 %v110_v27, %v109_v25 }
  0xea   :  { %v112_v30 = vmul.f32 0.125, %v111_v29  ;;  %v113_v31 = vmul.f32 %v103_v28, %v103_v28 }
  0xec   :  { %v114_v32 = vsub.f32 %v112_v30, %v113_v31 }
  0xee   :  { %v115_v33 = vmax.f32 %v114_v32, 0.0 }
  0xf0   :  { %v117_v34 = vadd.f32 1e-05, %v115_v33 }
  0xf2   :  { %265 = vrsqrt.f32 %v117_v34 }
  0xfc   :  { %v266_v38 = vpop.eup %265 }
  0xfd   :  { %v119_v39 = vmul.f32 %v266_v38, %v116_v37 }
  0xff   :  { %v120_v41 = vmul.f32 %v119_v39, %v103_v28  ;;  %v128_v43 = vrot.slane %v119_v39, %v127_v40 }
 0x101   :  { %v122_v42 = vrot.slane %v120_v41, 7  ;;  %v129_v46 = vmul.f32 %v128_v43, %v90_v12 }
 0x103   :  { %v124_v45 = vsub.f32 %v116_v37, %v122_v42 }
 0x105   :  { %v133_v47 = vrot.slane %v124_v45, %v132_v44 }
 0x107   :  { %v134_v48 = vadd.f32 %v133_v47, %v129_v46 }
 0x109   :  { %v135_v49 = vmul.f32 0.01, %v134_v48 }
 0x10b   :  { %v136_v50 = vmax.f32 %v134_v48, %v135_v49 }
 0x10d   :  { %251 = vmatmul.mubr.msk.f32.vlgmr.msra.gmra.mrb[0].mxu1 %vm94_vm2, %v136_v50 }
 0x1e0   :  { %v215_v52 = vpop.f32.mrb[0].mxu1 }
 0x1e1   :  { %v216_v53 = vadd.f32 %v225_v51, %v215_v52  ;;  %v252_v54 = vpop.f32.mrb[1].mxu1 }
 0x1e3   :  { %219 = vst [vmem:[%s332_s4] sm:$0xff] %v216_v53 }

</bundles_post_ra>
